<compile_context>
chip_gen: v7x
topology: tpu7x:2x2x1
jax: 0.10.0
libtpu: 0.0.40
codegen_flags: <defaults>
</compile_context>

<pallas_src>
import functools

import jax
import jax.numpy as jnp
from jax.experimental import pallas as pl
from jax.experimental.pallas import tpu as pltpu


def gru_chunk_kernel(gi_ref, valid_ref, whh_ref, bhn_ref, out_ref, hid_ref,
                     *, unroll=True):
    """One grid step == Tc GRU timesteps for one batch block.

    gi_ref    : (Tc, Bb, 3H)  packed input projection [r|z|n], biases folded
                              (compute dtype: bf16 or f32)
    valid_ref : (Tc, Bb, 1)   f32 {0,1} per-timestep validity mask
    whh_ref   : (H, 3H)       fused, pre-transposed hidden weights [r|z|n]
                              (compute dtype)
    bhn_ref   : (1, H)        n-gate hidden bias (gated by r, cannot be folded)
    out_ref   : (Tc, Bb, H)   per-timestep outputs for this chunk (f32)
    hid_ref   : (1, Bb, H)    resident hidden-state carrier (constant idx map)
    """
    c = pl.program_id(1)                       # time-chunk index (sequential)
    tc = out_ref.shape[0]
    H = hid_ref.shape[-1]

    @pl.when(c == 0)
    def _():
        # init_hidden(): zeros at the start of each batch block's sweep.
        hid_ref[...] = jnp.zeros_like(hid_ref)

    # Loop-invariant loads hoisted out of the recurrence.
    w_hh = whh_ref[...]                        # (H, 3H)  compute dtype
    b_n = bhn_ref[...]                         # (1, H)   f32

    def step(i, h):
        # ONE fused MXU call per timestep; f32 accumulation.
        gh = jnp.dot(h.astype(w_hh.dtype), w_hh,
                     preferred_element_type=jnp.float32)       # (Bb, 3H)
        gi = gi_ref[i].astype(jnp.float32)                     # (Bb, 3H)
        v = valid_ref[i]                                       # (Bb, 1) f32

        r = jax.nn.sigmoid(gi[:, 0 * H:1 * H] + gh[:, 0 * H:1 * H])
        z = jax.nn.sigmoid(gi[:, 1 * H:2 * H] + gh[:, 1 * H:2 * H])
        n = jnp.tanh(gi[:, 2 * H:3 * H] + r * (gh[:, 2 * H:3 * H] + b_n))
        h_new = (1.0 - z) * n + z * h

        # pack_padded_sequence semantics: only t < length updates the state;
        # pad_packed_sequence zeroes padded output positions.  The masked
        # value is reused for both the store and the carry.
        masked = v * h_new                                     # (Bb, H)
        out_ref[i] = masked
        return masked + (h - v * h)                            # v?h_new:h

    h_final = jax.lax.fori_loop(0, tc, step, hid_ref[0], unroll=unroll)
    hid_ref[0] = h_final           # hidden at each sequence's last valid t


def encoder_forward(tokens, lengths, params, *, time_chunk=16,
                    batch_block=None, compute_dtype=jnp.bfloat16,
                    unroll=True, vmem_limit_mb=48):
    """tokens: (T, B) int32 time-major, lengths: (B,) int32 (sorted desc)."""
    emb = params["embedding"]                       # (V, E)
    w_ih = params["w_ih"]                           # (3H, E)  PyTorch layout
    w_hh = params["w_hh"]                           # (3H, H)
    b_ih = params["b_ih"]                           # (3H,)
    b_hh = params["b_hh"]                           # (3H,)

    xe = jnp.take(emb, tokens, axis=0)              # (T, B, E) — glue gather
    T, B, E = xe.shape
    H = w_hh.shape[1]

    if batch_block is None:
        batch_block = B                  # v7x: pass B//2 (multiple of 8)
    assert B % batch_block == 0
    assert batch_block == B or batch_block % 8 == 0  # (8,128) tiling rule
    nb = B // batch_block

    tc = max(1, min(time_chunk, T))
    n_chunks = -(-T // tc)
    t_pad = n_chunks * tc

    # --- Hoisted input projection: one big MXU matmul over all T*B rows.
    # b_ih and the r/z hidden biases are pure adds -> folded in here; the
    # n-gate hidden bias is multiplied by r, so it stays in the kernel.
    bias_fold = b_ih + jnp.concatenate(
        [b_hh[:2 * H], jnp.zeros((H,), b_hh.dtype)])
    gi = jnp.dot(xe.reshape(T * B, E), w_ih.T,
                 preferred_element_type=jnp.float32) + bias_fold   # (T*B, 3H)
    gi = gi.reshape(T, B, 3 * H)
    if t_pad != T:
        gi = jnp.pad(gi, ((0, t_pad - T), (0, 0), (0, 0)))
    # Single packed stream (one DMA per chunk); bf16 halves the HBM bytes.
    gi = gi.astype(compute_dtype)                                  # (T_pad,B,3H)

    # Per-timestep validity mask precomputed once (no per-step compare/convert
    # in the recurrence).
    valid = (jnp.arange(t_pad, dtype=jnp.int32)[:, None]
             < lengths.astype(jnp.int32)[None, :]).astype(jnp.float32)
    valid = valid.reshape(t_pad, B, 1)

    # Fused, pre-transposed hidden weights: (H, 3H), column blocks [r|z|n].
    whh_fused = jnp.transpose(w_hh).astype(compute_dtype)
    bhh_n = b_hh[2 * H:3 * H].reshape(1, H).astype(jnp.float32)

    gi_spec = pl.BlockSpec((tc, batch_block, 3 * H), lambda b, c: (c, b, 0))
    valid_spec = pl.BlockSpec((tc, batch_block, 1), lambda b, c: (c, b, 0))

    grid_spec = pltpu.PrefetchScalarGridSpec(
        num_scalar_prefetch=0,
        grid=(nb, n_chunks),
        in_specs=[
            gi_spec,                                            # packed GI
            valid_spec,                                         # valid mask
            pl.BlockSpec((H, 3 * H), lambda b, c: (0, 0)),      # fused W_hh
            pl.BlockSpec((1, H), lambda b, c: (0, 0)),          # b_hh (n gate)
        ],
        out_specs=[
            pl.BlockSpec((tc, batch_block, H), lambda b, c: (c, b, 0)),
            pl.BlockSpec((1, batch_block, H), lambda b, c: (0, b, 0)),
        ],
    )

    output, hidden = pl.pallas_call(
        functools.partial(gru_chunk_kernel, unroll=unroll),
        grid_spec=grid_spec,
        out_shape=(
            jax.ShapeDtypeStruct((t_pad, B, H), jnp.float32),
            jax.ShapeDtypeStruct((1, B, H), jnp.float32),
        ),
        compiler_params=pltpu.CompilerParams(
            # Batch axis is embarrassingly parallel (v7x 2nd TC takes half the
            # batch when batch_block = B//2); the time-chunk axis is a true
            # recurrence.
            dimension_semantics=("parallel", "arbitrary"),
            vmem_limit_bytes=(vmem_limit_mb << 20) if vmem_limit_mb else None),
    )(gi, valid, whh_fused, bhh_n)

    return output[:T], hidden


def encoder_reference(tokens, lengths, params):
    """Plain-JAX reference mirroring PyTorch packed-GRU semantics (f32)."""
    emb = params["embedding"]
    w_ih, w_hh = params["w_ih"], params["w_hh"]
    b_ih, b_hh = params["b_ih"], params["b_hh"]
    xe = jnp.take(emb, tokens, axis=0)
    T, B, E = xe.shape
    H = w_hh.shape[1]

    def step(h, inp):
        x_t, t = inp
        gi = x_t @ w_ih.T + b_ih
        gh = h @ w_hh.T + b_hh
        r = jax.nn.sigmoid(gi[:, :H] + gh[:, :H])
        z = jax.nn.sigmoid(gi[:, H:2 * H] + gh[:, H:2 * H])
        n = jnp.tanh(gi[:, 2 * H:] + r * gh[:, 2 * H:])
        h_new = (1.0 - z) * n + z * h
        valid = (lengths > t)[:, None].astype(jnp.float32)
        h_carry = valid * h_new + (1.0 - valid) * h
        return h_carry, valid * h_new

    h_final, outs = jax.lax.scan(
        step, jnp.zeros((B, H), jnp.float32), (xe, jnp.arange(T)))
    return outs, h_final[None]


def init_params(key, vocab_size, embedding_dim, encoder_units):
    k_emb, k1, k2, k3, k4 = jax.random.split(key, 5)
    H = encoder_units
    bound = 1.0 / jnp.sqrt(H)
    return {
        # nn.Embedding default init: N(0, 1)
        "embedding": jax.random.normal(
            k_emb, (vocab_size, embedding_dim), jnp.float32),
        # nn.GRU default init: U(-1/sqrt(H), 1/sqrt(H)), gate order [r, z, n]
        "w_ih": jax.random.uniform(k1, (3 * H, embedding_dim), jnp.float32,
                                   -bound, bound),
        "w_hh": jax.random.uniform(k2, (3 * H, H), jnp.float32, -bound, bound),
        "b_ih": jax.random.uniform(k3, (3 * H,), jnp.float32, -bound, bound),
        "b_hh": jax.random.uniform(k4, (3 * H,), jnp.float32, -bound, bound),
    }


if __name__ == "__main__":
    vocab_size = 20
    embedding_dim = 16
    encoder_units = 32
    batch_size = 4
    max_length = 8

    key = jax.random.PRNGKey(0)
    k_param, k_tok = jax.random.split(key)
    params = init_params(k_param, vocab_size, embedding_dim, encoder_units)

    # tokens: (T, B) time-major; lengths sorted descending
    # (pack_padded_sequence default enforce_sorted=True).
    tokens = jax.random.randint(
        k_tok, (max_length, batch_size), 0, vocab_size, dtype=jnp.int32)
    lengths = jnp.array([8, 6, 5, 3], dtype=jnp.int32)

    out_ref, hid_ref = encoder_reference(tokens, lengths, params)

    # time_chunk=4 -> 2 time chunks, exercising the resident hidden carry
    # across grid steps.

    # (a) f32 matmul path: exact vs. the reference.
    out_f32, hid_f32 = encoder_forward(
        tokens, lengths, params, time_chunk=4, compute_dtype=jnp.float32)
    jax.block_until_ready((out_f32, hid_f32))
    assert out_f32.shape == (max_length, batch_size, encoder_units)
    assert hid_f32.shape == (1, batch_size, encoder_units)
    assert jnp.allclose(out_f32, out_ref, atol=1e-5, rtol=1e-5)
    assert jnp.allclose(hid_f32, hid_ref, atol=1e-5, rtol=1e-5)

    # (b) bf16 matmul/GI path (the perf-recommended config): f32 accumulation,
    #     so only operand-rounding error — loose tolerance.
    out_bf, hid_bf = encoder_forward(
        tokens, lengths, params, time_chunk=4, compute_dtype=jnp.bfloat16)
    jax.block_until_ready((out_bf, hid_bf))
    assert jnp.allclose(out_bf, out_ref, atol=5e-2, rtol=5e-2)
    assert jnp.allclose(hid_bf, hid_ref, atol=5e-2, rtol=5e-2)

    print("KERNEL_OK")
</pallas_src>

<mosaic_0001>
module attributes {stable_mosaic.version = 11 : i64} {
  func.func @gru_chunk_kernel(%arg0: i32, %arg1: i32, %arg2: memref<4x4x96xf32, #tpu.memory_space<vmem>>, %arg3: memref<4x4x1xf32, #tpu.memory_space<vmem>>, %arg4: memref<32x96xf32, #tpu.memory_space<vmem>>, %arg5: memref<1x32xf32, #tpu.memory_space<vmem>>, %arg6: memref<4x4x32xf32, #tpu.memory_space<vmem>>, %arg7: memref<1x4x32xf32, #tpu.memory_space<vmem>>) attributes {dimension_semantics = [#tpu.dimension_semantics<parallel>, #tpu.dimension_semantics<arbitrary>], iteration_bounds = array<i64: 1, 2>, scalar_prefetch = 0 : i64, scratch_operands = 0 : i64, tpu.core_type = #tpu.core_type<tc>, window_params = [{transform_indices = @transform_0, window_bounds = array<i64: 4, 4, 96>}, {transform_indices = @transform_1, window_bounds = array<i64: 4, 4, 1>}, {pipeline_mode = #tpu.pipeline_mode<synchronous>, transform_indices = @transform_2, window_bounds = array<i64: 32, 96>}, {pipeline_mode = #tpu.pipeline_mode<synchronous>, transform_indices = @transform_3, window_bounds = array<i64: 1, 32>}, {transform_indices = @transform_4, window_bounds = array<i64: 4, 4, 32>}, {transform_indices = @transform_5, window_bounds = array<i64: 1, 4, 32>}]} {
    %c0_i32 = arith.constant 0 : i32
    %0 = arith.cmpi eq, %arg1, %c0_i32 : i32
    %1 = arith.extui %0 : i1 to i32
    %c0_i32_0 = arith.constant 0 : i32
    %2 = arith.cmpi ne, %1, %c0_i32_0 : i32
    scf.if %2 {
      %cst_50 = arith.constant 0.000000e+00 : f32
      %190 = vector.broadcast %cst_50 : f32 to vector<1x4x32xf32>
      %c0_51 = arith.constant 0 : index
      %c0_52 = arith.constant 0 : index
      %c0_53 = arith.constant 0 : index
      %191 = vector.load %arg7[%c0_51, %c0_52, %c0_53] : memref<1x4x32xf32, #tpu.memory_space<vmem>>, vector<1x4x32xf32>
      tpu.vector_store %arg7[%c0_51, %c0_52, %c0_53], %190 {strides = array<i32>} : memref<1x4x32xf32, #tpu.memory_space<vmem>>, vector<1x4x32xf32>,
    } else {
    }
    %c0 = arith.constant 0 : index
    %c0_1 = arith.constant 0 : index
    %3 = vector.load %arg4[%c0, %c0_1] : memref<32x96xf32, #tpu.memory_space<vmem>>, vector<32x96xf32>
    %c0_2 = arith.constant 0 : index
    %c0_3 = arith.constant 0 : index
    %4 = vector.load %arg5[%c0_2, %c0_3] : memref<1x32xf32, #tpu.memory_space<vmem>>, vector<1x32xf32>
    %c0_4 = arith.constant 0 : index
    %c0_5 = arith.constant 0 : index
    %c0_6 = arith.constant 0 : index
    %5 = vector.load %arg7[%c0_4, %c0_5, %c0_6] : memref<1x4x32xf32, #tpu.memory_space<vmem>>, vector<1x4x32xf32>
    %6 = vector.shape_cast %5 : vector<1x4x32xf32> to vector<4x32xf32>
    %c0_i32_7 = arith.constant 0 : i32
    %cst = arith.constant dense<0.000000e+00> : vector<4x96xf32>
    %7 = tpu.matmul %6, %3, %cst {dimension_numbers = #tpu.dot_dimension_numbers<[1], [0], [0], [1], [0, 0, 1, 1], [], []>} : vector<4x32xf32>, vector<32x96xf32>, vector<4x96xf32> -> vector<4x96xf32>
    %8 = arith.index_cast %c0_i32_7 : i32 to index
    %c0_8 = arith.constant 0 : index
    %c0_9 = arith.constant 0 : index
    %9 = vector.load %arg2[%8, %c0_8, %c0_9] : memref<4x4x96xf32, #tpu.memory_space<vmem>>, vector<1x4x96xf32>
    %10 = vector.shape_cast %9 : vector<1x4x96xf32> to vector<4x96xf32>
    %11 = arith.index_cast %c0_i32_7 : i32 to index
    %c0_10 = arith.constant 0 : index
    %c0_11 = arith.constant 0 : index
    %12 = vector.load %arg3[%11, %c0_10, %c0_11] : memref<4x4x1xf32, #tpu.memory_space<vmem>>, vector<1x4x1xf32>
    %13 = vector.shape_cast %12 : vector<1x4x1xf32> to vector<4x1xf32>
    %14 = vector.extract_strided_slice %10 {offsets = [0, 0], sizes = [4, 32], strides = [1, 1]} : vector<4x96xf32> to vector<4x32xf32>
    %15 = vector.extract_strided_slice %7 {offsets = [0, 0], sizes = [4, 32], strides = [1, 1]} : vector<4x96xf32> to vector<4x32xf32>
    %16 = arith.addf %14, %15 : vector<4x32xf32>
    %17 = arith.negf %16 : vector<4x32xf32>
    %18 = math.exp %17 : vector<4x32xf32>
    %cst_12 = arith.constant 1.000000e+00 : f32
    %19 = vector.broadcast %cst_12 : f32 to vector<4x32xf32>
    %20 = arith.addf %19, %18 : vector<4x32xf32>
    %21 = arith.divf %19, %20 : vector<4x32xf32>
    %22 = vector.extract_strided_slice %10 {offsets = [0, 32], sizes = [4, 32], strides = [1, 1]} : vector<4x96xf32> to vector<4x32xf32>
    %23 = vector.extract_strided_slice %7 {offsets = [0, 32], sizes = [4, 32], strides = [1, 1]} : vector<4x96xf32> to vector<4x32xf32>
    %24 = arith.addf %22, %23 : vector<4x32xf32>
    %25 = arith.negf %24 : vector<4x32xf32>
    %26 = math.exp %25 : vector<4x32xf32>
    %cst_13 = arith.constant 1.000000e+00 : f32
    %27 = vector.broadcast %cst_13 : f32 to vector<4x32xf32>
    %28 = arith.addf %27, %26 : vector<4x32xf32>
    %29 = arith.divf %27, %28 : vector<4x32xf32>
    %30 = vector.extract_strided_slice %10 {offsets = [0, 64], sizes = [4, 32], strides = [1, 1]} : vector<4x96xf32> to vector<4x32xf32>
    %31 = vector.extract_strided_slice %7 {offsets = [0, 64], sizes = [4, 32], strides = [1, 1]} : vector<4x96xf32> to vector<4x32xf32>
    %32 = vector.broadcast %4 : vector<1x32xf32> to vector<4x32xf32>
    %33 = arith.addf %31, %32 : vector<4x32xf32>
    %34 = arith.mulf %21, %33 : vector<4x32xf32>
    %35 = arith.addf %30, %34 : vector<4x32xf32>
    %36 = math.tanh %35 : vector<4x32xf32>
    %cst_14 = arith.constant 1.000000e+00 : f32
    %37 = vector.broadcast %cst_14 : f32 to vector<4x32xf32>
    %38 = arith.subf %37, %29 : vector<4x32xf32>
    %39 = arith.mulf %38, %36 : vector<4x32xf32>
    %40 = arith.mulf %29, %6 : vector<4x32xf32>
    %41 = arith.addf %39, %40 : vector<4x32xf32>
    %42 = vector.broadcast %13 : vector<4x1xf32> to vector<4x32xf32>
    %43 = arith.mulf %42, %41 : vector<4x32xf32>
    %44 = arith.index_cast %c0_i32_7 : i32 to index
    %c0_15 = arith.constant 0 : index
    %c0_16 = arith.constant 0 : index
    %45 = vector.load %arg6[%44, %c0_15, %c0_16] : memref<4x4x32xf32, #tpu.memory_space<vmem>>, vector<1x4x32xf32>
    %46 = vector.shape_cast %45 : vector<1x4x32xf32> to vector<4x32xf32>
    %47 = vector.shape_cast %43 : vector<4x32xf32> to vector<1x4x32xf32>
    tpu.vector_store %arg6[%44, %c0_15, %c0_16], %47 {strides = array<i32>} : memref<4x4x32xf32, #tpu.memory_space<vmem>>, vector<1x4x32xf32>,
    %48 = vector.broadcast %13 : vector<4x1xf32> to vector<4x32xf32>
    %49 = arith.mulf %48, %6 : vector<4x32xf32>
    %50 = arith.subf %6, %49 : vector<4x32xf32>
    %51 = arith.addf %43, %50 : vector<4x32xf32>
    %c1_i32 = arith.constant 1 : i32
    %cst_17 = arith.constant dense<0.000000e+00> : vector<4x96xf32>
    %52 = tpu.matmul %51, %3, %cst_17 {dimension_numbers = #tpu.dot_dimension_numbers<[1], [0], [0], [1], [0, 0, 1, 1], [], []>} : vector<4x32xf32>, vector<32x96xf32>, vector<4x96xf32> -> vector<4x96xf32>
    %53 = arith.index_cast %c1_i32 : i32 to index
    %c0_18 = arith.constant 0 : index
    %c0_19 = arith.constant 0 : index
    %54 = vector.load %arg2[%53, %c0_18, %c0_19] : memref<4x4x96xf32, #tpu.memory_space<vmem>>, vector<1x4x96xf32>
    %55 = vector.shape_cast %54 : vector<1x4x96xf32> to vector<4x96xf32>
    %56 = arith.index_cast %c1_i32 : i32 to index
    %c0_20 = arith.constant 0 : index
    %c0_21 = arith.constant 0 : index
    %57 = vector.load %arg3[%56, %c0_20, %c0_21] : memref<4x4x1xf32, #tpu.memory_space<vmem>>, vector<1x4x1xf32>
    %58 = vector.shape_cast %57 : vector<1x4x1xf32> to vector<4x1xf32>
    %59 = vector.extract_strided_slice %55 {offsets = [0, 0], sizes = [4, 32], strides = [1, 1]} : vector<4x96xf32> to vector<4x32xf32>
    %60 = vector.extract_strided_slice %52 {offsets = [0, 0], sizes = [4, 32], strides = [1, 1]} : vector<4x96xf32> to vector<4x32xf32>
    %61 = arith.addf %59, %60 : vector<4x32xf32>
    %62 = arith.negf %61 : vector<4x32xf32>
    %63 = math.exp %62 : vector<4x32xf32>
    %cst_22 = arith.constant 1.000000e+00 : f32
    %64 = vector.broadcast %cst_22 : f32 to vector<4x32xf32>
    %65 = arith.addf %64, %63 : vector<4x32xf32>
    %66 = arith.divf %64, %65 : vector<4x32xf32>
    %67 = vector.extract_strided_slice %55 {offsets = [0, 32], sizes = [4, 32], strides = [1, 1]} : vector<4x96xf32> to vector<4x32xf32>
    %68 = vector.extract_strided_slice %52 {offsets = [0, 32], sizes = [4, 32], strides = [1, 1]} : vector<4x96xf32> to vector<4x32xf32>
    %69 = arith.addf %67, %68 : vector<4x32xf32>
    %70 = arith.negf %69 : vector<4x32xf32>
    %71 = math.exp %70 : vector<4x32xf32>
    %cst_23 = arith.constant 1.000000e+00 : f32
    %72 = vector.broadcast %cst_23 : f32 to vector<4x32xf32>
    %73 = arith.addf %72, %71 : vector<4x32xf32>
    %74 = arith.divf %72, %73 : vector<4x32xf32>
    %75 = vector.extract_strided_slice %55 {offsets = [0, 64], sizes = [4, 32], strides = [1, 1]} : vector<4x96xf32> to vector<4x32xf32>
    %76 = vector.extract_strided_slice %52 {offsets = [0, 64], sizes = [4, 32], strides = [1, 1]} : vector<4x96xf32> to vector<4x32xf32>
    %77 = vector.broadcast %4 : vector<1x32xf32> to vector<4x32xf32>
    %78 = arith.addf %76, %77 : vector<4x32xf32>
    %79 = arith.mulf %66, %78 : vector<4x32xf32>
    %80 = arith.addf %75, %79 : vector<4x32xf32>
    %81 = math.tanh %80 : vector<4x32xf32>
    %cst_24 = arith.constant 1.000000e+00 : f32
    %82 = vector.broadcast %cst_24 : f32 to vector<4x32xf32>
    %83 = arith.subf %82, %74 : vector<4x32xf32>
    %84 = arith.mulf %83, %81 : vector<4x32xf32>
    %85 = arith.mulf %74, %51 : vector<4x32xf32>
    %86 = arith.addf %84, %85 : vector<4x32xf32>
    %87 = vector.broadcast %58 : vector<4x1xf32> to vector<4x32xf32>
    %88 = arith.mulf %87, %86 : vector<4x32xf32>
    %89 = arith.index_cast %c1_i32 : i32 to index
    %c0_25 = arith.constant 0 : index
    %c0_26 = arith.constant 0 : index
    %90 = vector.load %arg6[%89, %c0_25, %c0_26] : memref<4x4x32xf32, #tpu.memory_space<vmem>>, vector<1x4x32xf32>
    %91 = vector.shape_cast %90 : vector<1x4x32xf32> to vector<4x32xf32>
    %92 = vector.shape_cast %88 : vector<4x32xf32> to vector<1x4x32xf32>
    tpu.vector_store %arg6[%89, %c0_25, %c0_26], %92 {strides = array<i32>} : memref<4x4x32xf32, #tpu.memory_space<vmem>>, vector<1x4x32xf32>,
    %93 = vector.broadcast %58 : vector<4x1xf32> to vector<4x32xf32>
    %94 = arith.mulf %93, %51 : vector<4x32xf32>
    %95 = arith.subf %51, %94 : vector<4x32xf32>
    %96 = arith.addf %88, %95 : vector<4x32xf32>
    %c2_i32 = arith.constant 2 : i32
    %cst_27 = arith.constant dense<0.000000e+00> : vector<4x96xf32>
    %97 = tpu.matmul %96, %3, %cst_27 {dimension_numbers = #tpu.dot_dimension_numbers<[1], [0], [0], [1], [0, 0, 1, 1], [], []>} : vector<4x32xf32>, vector<32x96xf32>, vector<4x96xf32> -> vector<4x96xf32>
    %98 = arith.index_cast %c2_i32 : i32 to index
    %c0_28 = arith.constant 0 : index
    %c0_29 = arith.constant 0 : index
    %99 = vector.load %arg2[%98, %c0_28, %c0_29] : memref<4x4x96xf32, #tpu.memory_space<vmem>>, vector<1x4x96xf32>
    %100 = vector.shape_cast %99 : vector<1x4x96xf32> to vector<4x96xf32>
    %101 = arith.index_cast %c2_i32 : i32 to index
    %c0_30 = arith.constant 0 : index
    %c0_31 = arith.constant 0 : index
    %102 = vector.load %arg3[%101, %c0_30, %c0_31] : memref<4x4x1xf32, #tpu.memory_space<vmem>>, vector<1x4x1xf32>
    %103 = vector.shape_cast %102 : vector<1x4x1xf32> to vector<4x1xf32>
    %104 = vector.extract_strided_slice %100 {offsets = [0, 0], sizes = [4, 32], strides = [1, 1]} : vector<4x96xf32> to vector<4x32xf32>
    %105 = vector.extract_strided_slice %97 {offsets = [0, 0], sizes = [4, 32], strides = [1, 1]} : vector<4x96xf32> to vector<4x32xf32>
    %106 = arith.addf %104, %105 : vector<4x32xf32>
    %107 = arith.negf %106 : vector<4x32xf32>
    %108 = math.exp %107 : vector<4x32xf32>
    %cst_32 = arith.constant 1.000000e+00 : f32
    %109 = vector.broadcast %cst_32 : f32 to vector<4x32xf32>
    %110 = arith.addf %109, %108 : vector<4x32xf32>
    %111 = arith.divf %109, %110 : vector<4x32xf32>
    %112 = vector.extract_strided_slice %100 {offsets = [0, 32], sizes = [4, 32], strides = [1, 1]} : vector<4x96xf32> to vector<4x32xf32>
    %113 = vector.extract_strided_slice %97 {offsets = [0, 32], sizes = [4, 32], strides = [1, 1]} : vector<4x96xf32> to vector<4x32xf32>
    %114 = arith.addf %112, %113 : vector<4x32xf32>
    %115 = arith.negf %114 : vector<4x32xf32>
    %116 = math.exp %115 : vector<4x32xf32>
    %cst_33 = arith.constant 1.000000e+00 : f32
    %117 = vector.broadcast %cst_33 : f32 to vector<4x32xf32>
    %118 = arith.addf %117, %116 : vector<4x32xf32>
    %119 = arith.divf %117, %118 : vector<4x32xf32>
    %120 = vector.extract_strided_slice %100 {offsets = [0, 64], sizes = [4, 32], strides = [1, 1]} : vector<4x96xf32> to vector<4x32xf32>
    %121 = vector.extract_strided_slice %97 {offsets = [0, 64], sizes = [4, 32], strides = [1, 1]} : vector<4x96xf32> to vector<4x32xf32>
    %122 = vector.broadcast %4 : vector<1x32xf32> to vector<4x32xf32>
    %123 = arith.addf %121, %122 : vector<4x32xf32>
    %124 = arith.mulf %111, %123 : vector<4x32xf32>
    %125 = arith.addf %120, %124 : vector<4x32xf32>
    %126 = math.tanh %125 : vector<4x32xf32>
    %cst_34 = arith.constant 1.000000e+00 : f32
    %127 = vector.broadcast %cst_34 : f32 to vector<4x32xf32>
    %128 = arith.subf %127, %119 : vector<4x32xf32>
    %129 = arith.mulf %128, %126 : vector<4x32xf32>
    %130 = arith.mulf %119, %96 : vector<4x32xf32>
    %131 = arith.addf %129, %130 : vector<4x32xf32>
    %132 = vector.broadcast %103 : vector<4x1xf32> to vector<4x32xf32>
    %133 = arith.mulf %132, %131 : vector<4x32xf32>
    %134 = arith.index_cast %c2_i32 : i32 to index
    %c0_35 = arith.constant 0 : index
    %c0_36 = arith.constant 0 : index
    %135 = vector.load %arg6[%134, %c0_35, %c0_36] : memref<4x4x32xf32, #tpu.memory_space<vmem>>, vector<1x4x32xf32>
    %136 = vector.shape_cast %135 : vector<1x4x32xf32> to vector<4x32xf32>
    %137 = vector.shape_cast %133 : vector<4x32xf32> to vector<1x4x32xf32>
    tpu.vector_store %arg6[%134, %c0_35, %c0_36], %137 {strides = array<i32>} : memref<4x4x32xf32, #tpu.memory_space<vmem>>, vector<1x4x32xf32>,
    %138 = vector.broadcast %103 : vector<4x1xf32> to vector<4x32xf32>
    %139 = arith.mulf %138, %96 : vector<4x32xf32>
    %140 = arith.subf %96, %139 : vector<4x32xf32>
    %141 = arith.addf %133, %140 : vector<4x32xf32>
    %c3_i32 = arith.constant 3 : i32
    %cst_37 = arith.constant dense<0.000000e+00> : vector<4x96xf32>
    %142 = tpu.matmul %141, %3, %cst_37 {dimension_numbers = #tpu.dot_dimension_numbers<[1], [0], [0], [1], [0, 0, 1, 1], [], []>} : vector<4x32xf32>, vector<32x96xf32>, vector<4x96xf32> -> vector<4x96xf32>
    %143 = arith.index_cast %c3_i32 : i32 to index
    %c0_38 = arith.constant 0 : index
    %c0_39 = arith.constant 0 : index
    %144 = vector.load %arg2[%143, %c0_38, %c0_39] : memref<4x4x96xf32, #tpu.memory_space<vmem>>, vector<1x4x96xf32>
    %145 = vector.shape_cast %144 : vector<1x4x96xf32> to vector<4x96xf32>
    %146 = arith.index_cast %c3_i32 : i32 to index
    %c0_40 = arith.constant 0 : index
    %c0_41 = arith.constant 0 : index
    %147 = vector.load %arg3[%146, %c0_40, %c0_41] : memref<4x4x1xf32, #tpu.memory_space<vmem>>, vector<1x4x1xf32>
    %148 = vector.shape_cast %147 : vector<1x4x1xf32> to vector<4x1xf32>
    %149 = vector.extract_strided_slice %145 {offsets = [0, 0], sizes = [4, 32], strides = [1, 1]} : vector<4x96xf32> to vector<4x32xf32>
    %150 = vector.extract_strided_slice %142 {offsets = [0, 0], sizes = [4, 32], strides = [1, 1]} : vector<4x96xf32> to vector<4x32xf32>
    %151 = arith.addf %149, %150 : vector<4x32xf32>
    %152 = arith.negf %151 : vector<4x32xf32>
    %153 = math.exp %152 : vector<4x32xf32>
    %cst_42 = arith.constant 1.000000e+00 : f32
    %154 = vector.broadcast %cst_42 : f32 to vector<4x32xf32>
    %155 = arith.addf %154, %153 : vector<4x32xf32>
    %156 = arith.divf %154, %155 : vector<4x32xf32>
    %157 = vector.extract_strided_slice %145 {offsets = [0, 32], sizes = [4, 32], strides = [1, 1]} : vector<4x96xf32> to vector<4x32xf32>
    %158 = vector.extract_strided_slice %142 {offsets = [0, 32], sizes = [4, 32], strides = [1, 1]} : vector<4x96xf32> to vector<4x32xf32>
    %159 = arith.addf %157, %158 : vector<4x32xf32>
    %160 = arith.negf %159 : vector<4x32xf32>
    %161 = math.exp %160 : vector<4x32xf32>
    %cst_43 = arith.constant 1.000000e+00 : f32
    %162 = vector.broadcast %cst_43 : f32 to vector<4x32xf32>
    %163 = arith.addf %162, %161 : vector<4x32xf32>
    %164 = arith.divf %162, %163 : vector<4x32xf32>
    %165 = vector.extract_strided_slice %145 {offsets = [0, 64], sizes = [4, 32], strides = [1, 1]} : vector<4x96xf32> to vector<4x32xf32>
    %166 = vector.extract_strided_slice %142 {offsets = [0, 64], sizes = [4, 32], strides = [1, 1]} : vector<4x96xf32> to vector<4x32xf32>
    %167 = vector.broadcast %4 : vector<1x32xf32> to vector<4x32xf32>
    %168 = arith.addf %166, %167 : vector<4x32xf32>
    %169 = arith.mulf %156, %168 : vector<4x32xf32>
    %170 = arith.addf %165, %169 : vector<4x32xf32>
    %171 = math.tanh %170 : vector<4x32xf32>
    %cst_44 = arith.constant 1.000000e+00 : f32
    %172 = vector.broadcast %cst_44 : f32 to vector<4x32xf32>
    %173 = arith.subf %172, %164 : vector<4x32xf32>
    %174 = arith.mulf %173, %171 : vector<4x32xf32>
    %175 = arith.mulf %164, %141 : vector<4x32xf32>
    %176 = arith.addf %174, %175 : vector<4x32xf32>
    %177 = vector.broadcast %148 : vector<4x1xf32> to vector<4x32xf32>
    %178 = arith.mulf %177, %176 : vector<4x32xf32>
    %179 = arith.index_cast %c3_i32 : i32 to index
    %c0_45 = arith.constant 0 : index
    %c0_46 = arith.constant 0 : index
    %180 = vector.load %arg6[%179, %c0_45, %c0_46] : memref<4x4x32xf32, #tpu.memory_space<vmem>>, vector<1x4x32xf32>
    %181 = vector.shape_cast %180 : vector<1x4x32xf32> to vector<4x32xf32>
    %182 = vector.shape_cast %178 : vector<4x32xf32> to vector<1x4x32xf32>
    tpu.vector_store %arg6[%179, %c0_45, %c0_46], %182 {strides = array<i32>} : memref<4x4x32xf32, #tpu.memory_space<vmem>>, vector<1x4x32xf32>,
    %183 = vector.broadcast %148 : vector<4x1xf32> to vector<4x32xf32>
    %184 = arith.mulf %183, %141 : vector<4x32xf32>
    %185 = arith.subf %141, %184 : vector<4x32xf32>
    %186 = arith.addf %178, %185 : vector<4x32xf32>
    %c4_i32 = arith.constant 4 : i32
    %c0_47 = arith.constant 0 : index
    %c0_48 = arith.constant 0 : index
    %c0_49 = arith.constant 0 : index
    %187 = vector.load %arg7[%c0_47, %c0_48, %c0_49] : memref<1x4x32xf32, #tpu.memory_space<vmem>>, vector<1x4x32xf32>
    %188 = vector.shape_cast %187 : vector<1x4x32xf32> to vector<4x32xf32>
    %189 = vector.shape_cast %186 : vector<4x32xf32> to vector<1x4x32xf32>
    tpu.vector_store %arg7[%c0_47, %c0_48, %c0_49], %189 {strides = array<i32>} : memref<1x4x32xf32, #tpu.memory_space<vmem>>, vector<1x4x32xf32>,
    return
  }
  func.func @transform_0(%arg0: i32, %arg1: i32) -> (i32, i32, i32) {
    %c0_i32 = arith.constant 0 : i32
    %c0_i32_0 = arith.constant 0 : i32
    return %arg1, %arg0, %c0_i32 : i32, i32, i32
  }
  func.func @transform_1(%arg0: i32, %arg1: i32) -> (i32, i32, i32) {
    %c0_i32 = arith.constant 0 : i32
    %c0_i32_0 = arith.constant 0 : i32
    return %arg1, %arg0, %c0_i32 : i32, i32, i32
  }
  func.func @transform_2(%arg0: i32, %arg1: i32) -> (i32, i32) {
    %c0_i32 = arith.constant 0 : i32
    %c0_i32_0 = arith.constant 0 : i32
    %c0_i32_1 = arith.constant 0 : i32
    return %c0_i32, %c0_i32_0 : i32, i32
  }
  func.func @transform_3(%arg0: i32, %arg1: i32) -> (i32, i32) {
    %c0_i32 = arith.constant 0 : i32
    %c0_i32_0 = arith.constant 0 : i32
    %c0_i32_1 = arith.constant 0 : i32
    return %c0_i32, %c0_i32_0 : i32, i32
  }
  func.func @transform_4(%arg0: i32, %arg1: i32) -> (i32, i32, i32) {
    %c0_i32 = arith.constant 0 : i32
    %c0_i32_0 = arith.constant 0 : i32
    return %arg1, %arg0, %c0_i32 : i32, i32, i32
  }
  func.func @transform_5(%arg0: i32, %arg1: i32) -> (i32, i32, i32) {
    %c0_i32 = arith.constant 0 : i32
    %c0_i32_0 = arith.constant 0 : i32
    %c0_i32_1 = arith.constant 0 : i32
    return %c0_i32, %arg0, %c0_i32_0 : i32, i32, i32
  }
}

</mosaic_0001>

<bundles_post_ra>
// kernel: tpu_custom_call.1
= control target key start
LH: loop header
LB: loop body
LE: loop exit
PB: predicated region body
PF: predicated region fallthrough
CT: control target
= control target key end

     0   :  { %11 = vsyncpa [#allocation3], 0  ;;  %s1673_s0 = inlined_call_operand.vmem [shape: f32[8,4,96], index: 0, kind: input, shape index: {}]   ;;  %s1674_s1 = inlined_call_operand.vmem [shape: f32[8,4,1], index: 1, kind: input, shape index: {}]   ;;  %s1675_s2 = inlined_call_operand.hbm [shape: f32[32,96], index: 2, kind: input, shape index: {}]   ;;  %s1676_s3 = inlined_call_operand.vmem [shape: f32[1,32], index: 3, kind: input, shape index: {}]   ;;  %s1677_s4 = inlined_call_operand.hbm [shape: f32[8,4,32], index: 4, kind: output, shape index: {0}]   ;;  %s1678_s5 = inlined_call_operand.hbm [shape: f32[1,4,32], index: 5, kind: output, shape index: {1}]  }
   0x1   :  { %12 = vsyncpa [#allocation4], 0 }
   0x2   :  { %14 = vsyncpa [#allocation4 + $0x1], 0 }
   0x3   :  { %15 = vsyncpa [#allocation7], 0  ;;  %s1382_s18 = smov 0   ;;  %s1384_s19 = smov 0  }
   0x4   :  { %s1386_s20 = smov 0   ;;  %s1388_s21 = smov 0  }
   0x5   :  { %s1390_s22 = smov 0   ;;  %s1392_s23 = smov 0  }
   0x6 LB: > { %s959_s24 = sadd.s32 4294967295, %s1336_s23   ;;  %s960_s25 = sadd.s32 4294967294, %s1336_s23   ;;  %s1336_s23 = sphi %s1392_s23, %s21_s23   ;;  %s1332_s22 = sphi %s1390_s22, %s1700_s22   ;;  %s1328_s21 = sphi %s1388_s21, %s1699_s21   ;;  %s1324_s20 = sphi %s1386_s20, %s1698_s20   ;;  %s1320_s19 = sphi %s1384_s19, %s1697_s19   ;;  %s1316_s18 = sphi %s1382_s18, %s1696_s18  }
   0x7   : > { %s30_s26 = sadd.s32 1, %s1332_s22  ;;  %s140_s27 = sadd.s32 1, %s1324_s20 }
   0x8   : > { %p31_p0 = scmp.ge.s32.totalorder %s30_s26, 2  ;;  %p150_p1 = scmp.ne.s32.totalorder %s1324_s20, %s1320_s19 }
   0x9   : > { %p1418_p2 = scmp.eq.s32.totalorder %s959_s24, 1  ;;  %p156_p3 = scmp.ne.s32.totalorder %s1320_s19, %s1316_s18 }
   0xa   : > { %s1702_s26 = smov (%p31_p0, %s30_s26), 0  ;;  %p157_p5 = scmp.eq.s32.totalorder %s960_s25, 1 }
   0xb   : > { %s1685_s28 = scalar_select %p1418_p2, 1, 0 }
   0xc   : > { %p1428_p4 = por %p1418_p2, %p150_p1  ;;  %s135_s30 = ssub.s32 %s1332_s22, %s1702_s26 }
   0xd   : > { %p961_p6 = scmp.ge.s32.totalorder %s1336_s23, 1  ;;  %p138_p7 = scmp.eq.s32.totalorder %s135_s30, 0 }
   0xe   : > { %s1686_s29 = scalar_select %p1428_p4, 1, 0 }
   0xf   : > { %p1435_p8 = por %p157_p5, %p156_p3  ;;  %p190_p9 = scmp.lt.s32.totalorder %s1336_s23, 3 }
  0x10   : > { %s1441_s7 = scalar_select %p138_p7, %s1324_s20, %s140_s27  }
  0x11   : > { %s1687_s6 = scalar_select %p1435_p8, 1, 0 }
  0x12   : > { %p1443_p10 = pnand %p961_p6, %p190_p9  ;;  %p1447_p11 = scmp.eq.s32.totalorder %s959_s24, 0 }
  0x13   : > { %s1338_s10 = smov [#allocation2]   ;;  %s1196_s15 = scalar_lea.hbm %s1675_s2, 512 }
  0x14   : > { %s1688_s8 = scalar_select %p1443_p10, 1, 0 }
  0x15   : > { %s1689_s9 = scalar_select %p1447_p11, 1, 0 }
  0x16   : > { %p1096_p12 = pneg %p1443_p10  ;;  %s202_s11 = sshll.u32 %s1338_s10, 4  ;;  %s203_s11 = int_to_ptr.vmem [resolvable:$true] %s202_s11 }
  0x17   : > { %p1197_p0 = scmp.ne.s32.totalorder %s1675_s2, %s1196_s15  ;;  %p1203_p6 = scmp.lt.u32.totalorder %s1196_s15, %s1675_s2 }
  0x18   : > { %p1455_p13 = pnand %p1447_p11, %p1096_p12 }
  0x1a   : > { %p1198_p1 = pneg %p1455_p13 }
  0x1c   : > { %p1199_p3 = pnand %p1198_p1, %p1197_p0 }
  0x1e   : > { %p1200_p5 = pneg %p1199_p3 }
  0x20   : > { %p1205_p7 = pnand %p1203_p6, %p1200_p5 }
  0x22   : > { %1208 = shalt.err (!%p1205_p7)
}
  0x23   : > { %s1209_s27 = scalar_lea.vmem %s203_s11, 512  ;;  %p1217_p2 = scmp.lt.s32.totalorder %s203_s11, %s203_s11 }
  0x24   : > { %p1210_p9 = scmp.ne.s32.totalorder %s203_s11, %s1209_s27  ;;  %p1218_p4 = scmp.lt.s32.totalorder %s1209_s27, %s1209_s27 }
  0x26   : > { %p1212_p12 = pnand %p1210_p9, %p1198_p1  ;;  %p1219_p11 = por %p1218_p4, %p1217_p2 }
  0x28   : > { %p1213_p8 = pneg %p1212_p12 }
  0x2a   : > { %p1220_p10 = pnand %p1219_p11, %p1213_p8 }
  0x2c   : > { %1223 = shalt.err (!%p1220_p10)
}
  0x2d   : > { %s1339_s30 = smov 128   ;;  %s1340_s10 = smov 8  }
  0x2e   : > { %1099 = dma.hbm_to_vmem [thread:$0]  (!%p1455_p13), %s1675_s2, 512, %s203_s11, [#allocation3], %s1339_s30, %s1339_s30, %s1340_s10  }
  0x2f   : > { %p1691_p0 = scmp.ne.s32.totalorder %s1688_s8, 0 }
  0x30   : > { %p1692_p3 = scmp.ne.s32.totalorder (!%p1691_p0), %s1689_s9, 0 }
  0x31   : > { %245 = sbr.rel (%p1691_p0) target bundleno = 2904 (0xb58), region = 36 }
  0x38   : > { %1303 = dma.done.wait (%p1692_p3), [#allocation3], 512  }
  0x39   : > { %1305 = vsyncadd (%p1692_p3), [#allocation3], 4294966784  ;;  %s279_s15 = sand.u32 1, %s1320_s19   ;;  %s967_s16 = sshll.u32 %s1328_s21, 2 }
  0x3a   : > { %s966_s12 = sshll.u32 %s279_s15, 4  ;;  %p285_p2 = scmp.lt.s32.totalorder %s967_s16, 7 }
  0x3b   : > { %s1495_s30 = scalar_lea.vmem [#allocation5], %s966_s12  ;;  %p971_p4 = scmp.ne.s32.totalorder %s1328_s21, 0 }
  0x3c   : > { %s1704_s16 = smov (!%p285_p2, %s967_s16), 7  ;;  %vm307_vm0 = vcmask (!%p971_p4), 257024   ;;  %v1341_v0 = vmov (!%p971_p4), 0.0  }
  0x3d   : > { %s968_s17 = sshll.u32 %s1704_s16, 2  ;;  %306 = sbr.rel (%p971_p4) target bundleno = 68 (0x44), region = 44  ;;  %308 = vst.msk [vmem:[#allocation6] sm:$0xf] (!%p971_p4), %vm307_vm0, %v1341_v0 }
  0x3e   : > { %s1488_s8 = scalar_lea.vmem %s1673_s0, %s968_s17  ;;  %s1493_s9 = scalar_lea.vmem %s1674_s1, %s968_s17 }
  0x44 PF: > { %v309_v1 = vld [vmem:[#allocation2] sm:$0xff]  ;;  %v310_v2 = vld [vmem:[#allocation2 + $0x8] sm:$0xff]  ;;  %v311_v3 = vld [vmem:[#allocation2 + $0x10] sm:$0xff]  ;;  %v1342_v4 = vmov 0.0|0.0   ;;  %vm1343_vm1 = vmmov 0   ;;  %v1344_v7 = vmov 0.0  }
  0x45   : > { %1062 = vmatprep.subr.bf16.mxu0 %v1342_v4  ;;  %v1499_v5 = vpack.c.bf16 %v310_v2, %v309_v1  ;;  %v312_v6 = vld [vmem:[#allocation2 + $0x18] sm:$0xff]  ;;  %1026 = vmatprep.mubr.msk.f32.mxu0 %vm1343_vm1, %v1344_v7  ;;  %v974_v8 = vld [vmem:[%s1676_s3] ss:$0 sm:$0xff]  ;;  %s1345_s14 = smov 64   ;;  %vm315_vm2 = vcmask 261120   ;;  %v1346_v11 = vmov 0  }
  0x46   : > { %1068 = vmatprep.subr.bf16.mxu1 %v1342_v4  ;;  %1037 = vmatprep.mubr.msk.f32.mxu1 %vm1343_vm1, %v1344_v7  ;;  %v1510_v9 = vpack.c.bf16 %v312_v6, %v311_v3  ;;  %v314_v10 = vld [vmem:[#allocation6] sm:$0xf]  ;;  %s1347_s16 = smov 32   ;;  %s1348_s12 = smov 96   ;;  %v977_v44 = vld [vmem:[%s1493_s9 + $0x4] sm:$0xf] }
  0x47   : > { %1064 = vmatpush3.bf16.msra.mxu0 %v1499_v5  ;;  %403 = vrot.lane.b32.xlu0 %v974_v8, %s1345_s14  ;;  %v389_v16 = vld [vmem:[%s1488_s8] sm:$0xf]  ;;  %v976_v45 = vld [vmem:[%s1488_s8 + $0x4] sm:$0xf]  ;;  %v982_v6 = vld [vmem:[%s1493_s9 + $0x8] sm:$0xf] }
  0x48   : > { %1065 = vmatprep.subr.bf16.mxu0 %v1342_v4  ;;  %1070 = vmatpush3.bf16.msra.mxu1 %v1499_v5  ;;  %v390_v24 = vld [vmem:[%s1493_s9] sm:$0xf]  ;;  %vm439_vm3 = vcmask 257024   ;;  %s997_s17 = sshll.u32 %s1328_s21, 8  ;;  %s831_s11 = sshll.u32 %s1495_s30, 4  ;;  %s1589_s11 = int_to_ptr.vmem [resolvable:$true] %s831_s11 }
  0x49   : > { %1071 = vmatprep.subr.bf16.mxu1 %v1342_v4  ;;  %1170 = vset.pattern.permute.xlu1 %v1346_v11  ;;  %s1587_s25 = scalar_lea.hbm %s1677_s4, %s997_s17  ;;  %s1349_s27 = smov [#allocation6]  }
  0x4a   : > { %1171 = vset.pattern.permute.xlu0 %v1346_v11  ;;  %s1597_s21 = scalar_lea.sflag [#allocation4], %s279_s15  ;;  %s1224_s10 = scalar_lea.vmem %s1589_s11, 256 }
  0x4b   : > { %1067 = vmatpush3.bf16.msra.mxu0 %v1510_v9  ;;  %p1225_p8 = scmp.ne.s32.totalorder %s1589_s11, %s1224_s10  ;;  %p1693_p10 = scmp.ne.s32.totalorder %s1686_s29, 0 }
  0x4c   : > { %1073 = vmatpush3.bf16.msra.mxu1 %v1510_v9  ;;  %1074 = vmatprep.subr.bf16.mxu0 %v1342_v4  ;;  %s1350_s13 = smov [#allocation5]  }
  0x4d   : > { %1080 = vmatprep.subr.bf16.mxu1 %v1342_v4  ;;  %p1226_p11 = pnand %p1225_p8, %p1693_p10 }
  0x4e   : > { %1027 = vmatmul.mubr.msk.f32.vlgmr.msra.gmra.mrb[0].mxu0 %vm315_vm2, %v314_v10 }
  0x4f   : > { %1076 = vmatpush3.bf16.msra.mxu0 %v1499_v5  ;;  %1048 = vmatprep.mubr.msk.f32.mxu0 %vm1343_vm1, %v1344_v7  ;;  %p1227_p13 = pneg %p1226_p11 }
  0x50   : > { %1077 = vmatprep.subr.bf16.mxu0 %v1342_v4 }
  0x53   : > { %1079 = vmatpush3.bf16.msra.mxu0 %v1510_v9 }
  0xb9   : > { %v1526_v12 = vpop.permute.xlu0 %403 }
 0x121   : > { %v385_v13 = vpop.f32.mrb[0].mxu0 }
 0x122   : > { %v406_v14 = vadd.f32 %v1526_v12, %v385_v13  ;;  %v1028_v15 = vpop.f32.mrb[1].mxu0  ;;  %v391_v17 = vadd.f32 %v389_v16, %v385_v13 }
 0x124   : > { %408 = vrot.lane.b32.xlu0 %v406_v14, %s1345_s14  ;;  %v973_v18 = vmul.f32 -1.442695, %v391_v17 }
 0x126   : > { %1172 = vpow2.f32 %v973_v18 }
 0x130   : > { %v1173_v19 = vpop.eup %1172 }
 0x131   : > { %v395_v20 = vadd.f32 1.0, %v1173_v19 }
 0x133   : > { %1174 = vrcp.f32 %v395_v20 }
 0x13d   : > { %v1175_v21 = vpop.eup %1174 }
 0x13e   : > { %v418_v32 = vsub.f32 1.0, %v1175_v21 }
 0x196   : > { %v409_v22 = vpop.permute.xlu0 %408 }
 0x197   : > { %v411_v23 = vmul.f32 %v1175_v21, %v409_v22 }
 0x199   : > { %413 = vrot.lane.b32.xlu1 %v411_v23, %s1345_s14 }
 0x19d   : > { %431 = vperm.xlu1 %1170, %v390_v24  }
 0x1a1   : > { %424 = vrot.lane.b32.xlu1 %v314_v10, %s1347_s16 }
 0x20b   : > { %v414_v25 = vpop.permute.xlu1 %413 }
 0x20c   : > { %v416_v26 = vadd.f32 %v414_v25, %v389_v16 }
 0x20e   : > { %1176 = vtanh.f32 %v416_v26 }
 0x218   : > { %v1177_v27 = vpop.eup %1176 }
 0x219   : > { %420 = vrot.lane.b32.xlu0 %v1177_v27, %s1348_s12 }
 0x21c   : > { %v432_v28 = vpop.permute.xlu1 %431 }
 0x21d   : > { %v441_v29 = vmul.f32 %v432_v28, %v314_v10 }
 0x21f   : > { %v442_v30 = vsub.f32 %v314_v10, %v441_v29 }
 0x220   : > { %v425_v31 = vpop.permute.xlu1 %424 }
 0x221   : > { %444 = vrot.lane.b32.xlu0 %v442_v30, %s1347_s16  ;;  %v427_v34 = vmul.f32 %v1175_v21, %v425_v31  ;;  %s1228_s16 = sshll.u32 %s1350_s13, 4  ;;  %s1229_s16 = int_to_ptr.vmem [resolvable:$false] %s1228_s16 }
 0x222   : > { %p1231_p1 = scmp.lt.s32.totalorder %s1589_s11, %s1229_s16 }
 0x28b   : > { %v421_v33 = vpop.permute.xlu0 %420 }
 0x28c   : > { %v423_v35 = vmul.f32 %v421_v33, %v418_v32  ;;  %v987_v33 = vld [vmem:[%s1493_s9 + $0xc] sm:$0xf]  ;;  %s847_s9 = sshll.u32 %s1349_s27, 4  ;;  %s1593_s9 = int_to_ptr.vmem [resolvable:$true] %s847_s9 }
 0x28e   : > { %v428_v36 = vadd.f32 %v427_v34, %v423_v35  ;;  %v986_v34 = vld [vmem:[%s1488_s8 + $0xc] sm:$0xf] }
 0x290   : > { %v1534_v37 = vmul.f32 %v432_v28, %v428_v36 }
 0x293   : > { %v445_v38 = vpop.permute.xlu0 %444 }
 0x294   : > { %v447_v39 = vadd.f32 %v445_v38, %v1534_v37 }
 0x296   : > { %449 = vrot.lane.b32.xlu1 %v447_v39, %s1348_s12 }
 0x308   : > { %v450_v40 = vpop.permute.xlu1 %449 }
 0x309   : > { %1038 = vmatmul.mubr.msk.f32.vlgmr.msra.gmra.mrb[0].mxu1 %vm315_vm2, %v450_v40 }
 0x30a   : > { %1082 = vmatpush3.bf16.msra.mxu1 %v1499_v5  ;;  %1059 = vmatprep.mubr.msk.f32.mxu1 %vm1343_vm1, %v1344_v7  ;;  %v981_v7 = vld [vmem:[%s1488_s8 + $0x8] sm:$0xf] }
 0x30b   : > { %1083 = vmatprep.subr.bf16.mxu1 %v1342_v4 }
 0x30e   : > { %1085 = vmatpush3.bf16.msra.mxu1 %v1510_v9 }
 0x3dc   : > { %v519_v41 = vpop.f32.mrb[0].mxu1 }
 0x3dd   : > { %v534_v42 = vadd.f32 %v519_v41, %v1526_v12  ;;  %v1039_v43 = vpop.f32.mrb[1].mxu1  ;;  %v527_v46 = vadd.f32 %v976_v45, %v519_v41 }
 0x3df   : > { %536 = vrot.lane.b32.xlu0 %v534_v42, %s1345_s14  ;;  %v978_v47 = vmul.f32 -1.442695, %v527_v46 }
 0x3e1   : > { %1178 = vpow2.f32 %v978_v47 }
 0x3e3   : > { %556 = vperm.xlu0 %1171, %v977_v44  }
 0x3eb   : > { %v1179_v48 = vpop.eup %1178 }
 0x3ec   : > { %v531_v49 = vadd.f32 1.0, %v1179_v48 }
 0x3ee   : > { %1180 = vrcp.f32 %v531_v49 }
 0x3f8   : > { %v1181_v50 = vpop.eup %1180 }
 0x3f9   : > { %v546_v57 = vsub.f32 1.0, %v1181_v50  ;;  %v552_v60 = vmul.f32 %v1181_v50, %v447_v39 }
 0x451   : > { %v537_v51 = vpop.permute.xlu0 %536 }
 0x452   : > { %v539_v52 = vmul.f32 %v1181_v50, %v537_v51 }
 0x454   : > { %541 = vrot.lane.b32.xlu1 %v539_v52, %s1345_s14 }
 0x462   : > { %v557_v56 = vpop.permute.xlu0 %556 }
 0x463   : > { %v566_v59 = vmul.f32 %v557_v56, %v447_v39 }
 0x465   : > { %v567_v63 = vsub.f32 %v447_v39, %v566_v59 }
 0x4c6   : > { %v542_v53 = vpop.permute.xlu1 %541 }
 0x4c7   : > { %v544_v54 = vadd.f32 %v976_v45, %v542_v53 }
 0x4c9   : > { %1182 = vtanh.f32 %v544_v54 }
 0x4d3   : > { %v1183_v55 = vpop.eup %1182 }
 0x4d4   : > { %548 = vrot.lane.b32.xlu1 %v1183_v55, %s1348_s12 }
 0x546   : > { %v549_v58 = vpop.permute.xlu1 %548 }
 0x547   : > { %v551_v61 = vmul.f32 %v549_v58, %v546_v57 }
 0x549   : > { %v553_v62 = vadd.f32 %v552_v60, %v551_v61 }
 0x54b   : > { %v1550_v0 = vmul.f32 %v557_v56, %v553_v62 }
 0x54d   : > { %v568_v1 = vadd.f32 %v567_v63, %v1550_v0 }
 0x54f   : > { %570 = vrot.lane.b32.xlu1 %v568_v1, %s1348_s12 }
 0x5c1   : > { %v571_v2 = vpop.permute.xlu1 %570 }
 0x5c2   : > { %1049 = vmatmul.mubr.msk.f32.vlgmr.msra.gmra.mrb[2].mxu0 %vm315_vm2, %v571_v2 }
 0x695   : > { %v640_v3 = vpop.f32.mrb[2].mxu0 }
 0x696   : > { %v655_v4 = vadd.f32 %v640_v3, %v1526_v12  ;;  %v1050_v5 = vpop.f32.mrb[3].mxu0  ;;  %v648_v8 = vadd.f32 %v981_v7, %v640_v3 }
 0x698   : > { %657 = vrot.lane.b32.xlu0 %v655_v4, %s1345_s14  ;;  %v983_v9 = vmul.f32 -1.442695, %v648_v8 }
 0x69a   : > { %1184 = vpow2.f32 %v983_v9 }
 0x69c   : > { %677 = vperm.xlu0 %1171, %v982_v6  }
 0x6a4   : > { %v1185_v10 = vpop.eup %1184 }
 0x6a5   : > { %v652_v11 = vadd.f32 1.0, %v1185_v10 }
 0x6a7   : > { %1186 = vrcp.f32 %v652_v11 }
 0x6b1   : > { %v1187_v13 = vpop.eup %1186 }
 0x6b2   : > { %v667_v20 = vsub.f32 1.0, %v1187_v13  ;;  %v673_v23 = vmul.f32 %v1187_v13, %v568_v1 }
 0x70a   : > { %v658_v14 = vpop.permute.xlu0 %657 }
 0x70b   : > { %v660_v15 = vmul.f32 %v1187_v13, %v658_v14 }
 0x70d   : > { %662 = vrot.lane.b32.xlu1 %v660_v15, %s1345_s14 }
 0x71b   : > { %v678_v19 = vpop.permute.xlu0 %677 }
 0x71c   : > { %v687_v22 = vmul.f32 %v678_v19, %v568_v1 }
 0x71e   : > { %v688_v26 = vsub.f32 %v568_v1, %v687_v22 }
 0x77f   : > { %v663_v16 = vpop.permute.xlu1 %662 }
 0x780   : > { %v665_v17 = vadd.f32 %v981_v7, %v663_v16 }
 0x782   : > { %1188 = vtanh.f32 %v665_v17 }
 0x78c   : > { %v1189_v18 = vpop.eup %1188 }
 0x78d   : > { %669 = vrot.lane.b32.xlu1 %v1189_v18, %s1348_s12 }
 0x7ff   : > { %v670_v21 = vpop.permute.xlu1 %669 }
 0x800   : > { %v672_v24 = vmul.f32 %v670_v21, %v667_v20 }
 0x802   : > { %v674_v25 = vadd.f32 %v673_v23, %v672_v24 }
 0x804   : > { %v680_v27 = vmul.f32 %v678_v19, %v674_v25 }
 0x806   : > { %v689_v28 = vadd.f32 %v688_v26, %v680_v27 }
 0x808   : > { %691 = vrot.lane.b32.xlu0 %v689_v28, %s1348_s12 }
 0x87a   : > { %v692_v29 = vpop.permute.xlu0 %691 }
 0x87b   : > { %1060 = vmatmul.mubr.msk.f32.vlgmr.msra.gmra.mrb[2].mxu1 %vm315_vm2, %v692_v29 }
 0x94e   : > { %v761_v30 = vpop.f32.mrb[2].mxu1 }
 0x94f   : > { %v776_v31 = vadd.f32 %v761_v30, %v1526_v12  ;;  %v1061_v32 = vpop.f32.mrb[3].mxu1  ;;  %v769_v35 = vadd.f32 %v986_v34, %v761_v30 }
 0x951   : > { %778 = vrot.lane.b32.xlu1 %v776_v31, %s1345_s14  ;;  %v988_v36 = vmul.f32 -1.442695, %v769_v35 }
 0x953   : > { %1190 = vpow2.f32 %v988_v36 }
 0x955   : > { %798 = vperm.xlu1 %1170, %v987_v33  }
 0x959   : > { %436 = vrot.lane.b32.xlu1 %v1534_v37, %s1348_s12 }
 0x95d   : > { %682 = vrot.lane.b32.xlu1 %v680_v27, %s1348_s12  ;;  %v1191_v38 = vpop.eup %1190 }
 0x95e   : > { %v773_v39 = vadd.f32 1.0, %v1191_v38 }
 0x960   : > { %1192 = vrcp.f32 %v773_v39 }
 0x96a   : > { %v1193_v12 = vpop.eup %1192 }
 0x96b   : > { %v788_v47 = vsub.f32 1.0, %v1193_v12  ;;  %v794_v50 = vmul.f32 %v1193_v12, %v689_v28 }
 0x9c3   : > { %v779_v40 = vpop.permute.xlu1 %778 }
 0x9c4   : > { %v781_v41 = vmul.f32 %v1193_v12, %v779_v40 }
 0x9c6   : > { %783 = vrot.lane.b32.xlu0 %v781_v41, %s1345_s14 }
 0x9d4   : > { %v799_v42 = vpop.permute.xlu1 %798 }
 0x9d5   : > { %v808_v49 = vmul.f32 %v799_v42, %v689_v28 }
 0x9d7   : > { %v809_v54 = vsub.f32 %v689_v28, %v808_v49 }
 0x9d8   : > { %v437_v43 = vpop.permute.xlu1 %436 }
 0x9d9   : > { %440 = vst.msk [vmem:[%s1495_s30] sm:$0xf] %vm439_vm3, %v437_v43 }
 0x9dc   : > { %v683_v37 = vpop.permute.xlu1 %682 }
 0x9dd   : > { %984 = vst.msk [vmem:[%s1495_s30 + $0x8] sm:$0xf] %vm439_vm3, %v683_v37 }
 0xa38   : > { %v784_v44 = vpop.permute.xlu0 %783 }
 0xa39   : > { %v786_v45 = vadd.f32 %v986_v34, %v784_v44 }
 0xa3b   : > { %1194 = vtanh.f32 %v786_v45 }
 0xa45   : > { %v1195_v46 = vpop.eup %1194 }
 0xa46   : > { %790 = vrot.lane.b32.xlu0 %v1195_v46, %s1348_s12 }
 0xa4a   : > { %561 = vrot.lane.b32.xlu0 %v1550_v0, %s1348_s12 }
 0xab8   : > { %v791_v48 = vpop.permute.xlu0 %790 }
 0xab9   : > { %v793_v51 = vmul.f32 %v791_v48, %v788_v47 }
 0xabb   : > { %v795_v52 = vadd.f32 %v794_v50, %v793_v51 }
 0xabc   : > { %v562_v53 = vpop.permute.xlu0 %561 }
 0xabd   : > { %979 = vst.msk [vmem:[%s1495_s30 + $0x4] sm:$0xf] %vm439_vm3, %v562_v53  ;;  %v801_v55 = vmul.f32 %v799_v42, %v795_v52 }
 0xabf   : > { %803 = vrot.lane.b32.xlu0 %v801_v55, %s1348_s12  ;;  %v810_v56 = vadd.f32 %v809_v54, %v801_v55 }
 0xac1   : > { %812 = vrot.lane.b32.xlu1 %v810_v56, %s1348_s12  ;;  %s1230_s12 = scalar_lea.vmem %s1229_s16, 512 }
 0xac2   : > { %p1232_p5 = scmp.lt.s32.totalorder %s1230_s12, %s1224_s10 }
 0xac4   : > { %p1233_p6 = por %p1232_p5, %p1231_p1 }
 0xac6   : > { %p1234_p7 = pnand %p1233_p6, %p1227_p13 }
 0xb31   : > { %v804_v57 = vpop.permute.xlu0 %803 }
 0xb32   : > { %989 = vst.msk [vmem:[%s1495_s30 + $0xc] sm:$0xf] %vm439_vm3, %v804_v57 }
 0xb33   : > { %v813_v58 = vpop.permute.xlu1 %812 }
 0xb34   : > { %1237 = shalt.err (!%p1234_p7)
}
 0xb35   : > { %s1238_s15 = scalar_lea.hbm %s1587_s25, 256  ;;  %s1242_s24 = scalar_lea.hbm %s1677_s4, 512 }
 0xb36   : > { %p1239_p9 = scmp.ne.s32.totalorder %s1587_s25, %s1238_s15  ;;  %p1243_p3 = scmp.lt.u32.totalorder %s1587_s25, %s1677_s4 }
 0xb37   : > { %p1244_p2 = scmp.lt.u32.totalorder %s1242_s24, %s1238_s15  ;;  %p1246_p8 = scmp.lt.u32.totalorder %s1238_s15, %s1587_s25 }
 0xb38   : > { %p1240_p12 = pnand %p1239_p9, %p1693_p10 }
 0xb39   : > { %p1245_p4 = por %p1244_p2, %p1243_p3 }
 0xb3a   : > { %p1241_p0 = pneg %p1240_p12 }
 0xb3b   : > { %p1247_p11 = por %p1246_p8, %p1245_p4 }
 0xb3d   : > { %p1248_p13 = pnand %p1247_p11, %p1241_p0 }
 0xb3f   : > { %1251 = shalt.err (!%p1248_p13)
}
 0xb40   : > { %s1351_s10 = smov 4   ;;  %815 = vst.msk [vmem:[#allocation6] sm:$0xf] %vm439_vm3, %v813_v58  ;;  %s1252_s13 = scalar_lea.vmem %s1593_s9, 64 }
 0xb41   : > { %1090 = dma.vmem_to_hbm [thread:$0]  (%p1693_p10), %s1589_s11, 256, %s1587_s25, %s1597_s21, %s1345_s14, %s1345_s14, %s1351_s10  }
 0xb42   : > { %p1253_p1 = scmp.ne.s32.totalorder %s1593_s9, %s1252_s13  ;;  %p1694_p5 = scmp.ne.s32.totalorder %s1685_s28, 0 }
 0xb43   : > { %p1259_p9 = scmp.lt.s32.totalorder %s1593_s9, %s1593_s9  ;;  %p1260_p12 = scmp.lt.s32.totalorder %s1252_s13, %s1252_s13 }
 0xb44   : > { %p1254_p6 = pnand %p1253_p1, %p1694_p5 }
 0xb45   : > { %p1261_p0 = por %p1260_p12, %p1259_p9 }
 0xb46   : > { %p1255_p7 = pneg %p1254_p6 }
 0xb48   : > { %p1262_p3 = pnand %p1261_p0, %p1255_p7 }
 0xb4a   : > { %1265 = shalt.err (!%p1262_p3)
}
 0xb4b   : > { %s1266_s12 = scalar_lea.hbm %s1678_s5, 64 }
 0xb4c   : > { %p1267_p10 = scmp.ne.s32.totalorder %s1678_s5, %s1266_s12  ;;  %p1272_p8 = scmp.lt.u32.totalorder %s1266_s12, %s1678_s5 }
 0xb4e   : > { %p1268_p2 = pnand %p1267_p10, %p1694_p5 }
 0xb50   : > { %p1269_p4 = pneg %p1268_p2 }
 0xb52   : > { %p1274_p11 = pnand %p1272_p8, %p1269_p4 }
 0xb54   : > { %1277 = shalt.err (!%p1274_p11)
}
 0xb55   : > { %1092 = dma.vmem_to_hbm [thread:$0]  (%p1694_p5), %s1593_s9, 64, %s1678_s5, [#allocation7]  }
 0xb56   : > { %1307 = dma.done.wait (%p1694_p5), [#allocation7], 64  }
 0xb57   : > { %1309 = vsyncadd (%p1694_p5), [#allocation7], 4294967232 }
 0xb58 PF: > { %p1108_p13 = scmp.ge.s32.totalorder %s1336_s23, 2  ;;  %s863_s17 = sand.u32 1, %s1316_s18  }
 0xb59   : > { %p1695_p1 = scmp.ne.s32.totalorder %s1687_s6, 0  ;;  %s864_s24 = scalar_lea.sflag [#allocation4], %s863_s17 }
 0xb5b   : > { %p1101_p6 = pnand %p1108_p13, %p1695_p1 }
 0xb5d   : > { %1311 = dma.done.wait (!%p1101_p6), %s864_s24, 256  }
 0xb5e   : > { %1313 = vsyncadd (!%p1101_p6), %s864_s24, 4294967040  ;;  %s21_s23 = sadd.s32 1, %s1336_s23   ;;  %s1696_s18 = smov %s1320_s19 }
 0xb5f   : > { %p18_p7 = scmp.ge.s32.totalorder %s21_s23, 4   ;;  %s1697_s19 = smov %s1324_s20 }
 0xb60   : > { %s1698_s20 = smov %s1441_s7  ;;  %s1699_s21 = smov %s1332_s22 }
 0xb61   : > { %s1700_s22 = smov %s1702_s26  ;;  %20 = sbr.rel (!%p18_p7) target bundleno = 6 (0x6), region = 101 }
 0xb68   :  { %869 = vsyncpa [#allocation3], 1 }
 0xb69   :  { %871 = vsyncpa [#allocation3 + $0x1], 1 }
 0xb6a   :  { %872 = vsyncpa [#allocation4], 1 }
 0xb6b   :  { %874 = vsyncpa [#allocation4 + $0x1], 1 }
 0xb6c   :  { %875 = vsyncpa [#allocation7], 1 }

</bundles_post_ra>
